<compile_context>
chip_gen: v7x
topology: tpu7x:2x2x1
jax: 0.10.0
libtpu: 0.0.40
codegen_flags: <defaults>
</compile_context>

<pallas_src>
import jax
import jax.numpy as jnp
from jax.experimental import pallas as pl
from jax.experimental.pallas import tpu as pltpu

NEG_SLOPE = 0.01   # torch.nn.LeakyReLU default negative_slope
_LANE = 128
_SUBLANE = 8


def _leaky_relu(x):
    return jnp.where(x > 0, x, NEG_SLOPE * x)


def _round_up(v, m):
    return (v + m - 1) // m * m


def mlp_encoder_kernel(x_ref, w1_ref, b1_ref, w2_ref, b2_ref, w3_ref, b3_ref, o_ref):
    # One batch tile per grid step; all three matmuls + activations fused.
    # x / intermediates are cast to bf16 just before each matmul (cheap VPU work in VMEM,
    # no extra HBM traffic); accumulation stays f32 on the MXU.
    x = x_ref[...].astype(jnp.bfloat16)

    h1 = jnp.dot(x, w1_ref[...], preferred_element_type=jnp.float32) + b1_ref[...]
    h1 = _leaky_relu(h1).astype(jnp.bfloat16)

    h2 = jnp.dot(h1, w2_ref[...], preferred_element_type=jnp.float32) + b2_ref[...]
    h2 = _leaky_relu(h2).astype(jnp.bfloat16)

    out = jnp.dot(h2, w3_ref[...], preferred_element_type=jnp.float32) + b3_ref[...]
    o_ref[...] = out.astype(o_ref.dtype)


def mlp_encoder(x, params, *, tile_batch=256):
    """Forward pass of MLPEncoder via a fused, batch-tiled Pallas kernel.

    x: [B, state_dim]
    params: w1[state,hidden], b1[1,hidden], w2[hidden,2*hidden], b2[1,2*hidden],
            w3[2*hidden,out], b3[1,out]   (weights stored as PyTorch W transposed)
    Returns: [B, out_dim] in x.dtype.
    """
    B, state_dim = x.shape
    hidden = params["w1"].shape[1]
    hidden2 = params["w2"].shape[1]
    out_dim = params["w3"].shape[1]

    # ---- dtype plumbing: bf16 weights (f32 accumulate on MXU), f32 biases -------------
    w1 = params["w1"].astype(jnp.bfloat16)
    w2 = params["w2"].astype(jnp.bfloat16)
    w3 = params["w3"].astype(jnp.bfloat16)
    b1 = params["b1"].astype(jnp.float32)
    b2 = params["b2"].astype(jnp.float32)
    b3 = params["b3"].astype(jnp.float32)

    # ---- lane-dense output: zero-pad out_dim up to a multiple of 128 -------------------
    out_pad = _round_up(max(out_dim, _LANE), _LANE)
    if out_pad != out_dim:
        w3 = jnp.pad(w3, ((0, 0), (0, out_pad - out_dim)))
        b3 = jnp.pad(b3, ((0, 0), (0, out_pad - out_dim)))

    # ---- batch tiling: multiple of 8 (fp32 sublane), pad B up to a whole tile ----------
    tb = _round_up(max(int(tile_batch), _SUBLANE), _SUBLANE)
    tb = min(tb, _round_up(B, _SUBLANE))
    assert tb % _SUBLANE == 0, "tile_batch must be a multiple of 8"
    B_pad = _round_up(B, tb)
    if B_pad != B:
        x = jnp.pad(x, ((0, B_pad - B), (0, 0)))
    grid = (B_pad // tb,)

    # ---- VMEM budget (2x-buffered x/out tiles + resident weights + live intermediates) -
    itemsize = x.dtype.itemsize
    x_tile = tb * _round_up(state_dim, _LANE) * itemsize
    o_tile = tb * out_pad * itemsize
    w_bytes = (_round_up(state_dim, _SUBLANE) * _round_up(hidden, _LANE)
               + _round_up(hidden, _SUBLANE) * _round_up(hidden2, _LANE)
               + _round_up(hidden2, _SUBLANE) * out_pad) * 2  # bf16
    b_bytes = (_round_up(hidden, _LANE) + _round_up(hidden2, _LANE) + out_pad) * _SUBLANE * 4
    live = tb * (_round_up(hidden, _LANE) + _round_up(hidden2, _LANE) + out_pad) * 4
    vmem_est = 2 * (x_tile + o_tile) + 2 * (w_bytes + b_bytes) + live
    # Stay within v7x's 64 MiB physical VMEM; raise above the 16/32 MiB scoped default.
    vmem_limit = int(min(64 * 2 ** 20, max(2 * vmem_est, 32 * 2 ** 20)))

    flops = 2 * B_pad * (state_dim * hidden + hidden * hidden2 + hidden2 * out_pad)
    bytes_accessed = (B_pad * state_dim * itemsize + B_pad * out_pad * itemsize
                      + w_bytes + b_bytes)

    in_specs = [
        pl.BlockSpec((tb, state_dim), lambda i: (i, 0)),      # x  (streamed along grid)
        pl.BlockSpec((state_dim, hidden), lambda i: (0, 0)),  # w1 (grid-invariant)
        pl.BlockSpec((1, hidden), lambda i: (0, 0)),          # b1
        pl.BlockSpec((hidden, hidden2), lambda i: (0, 0)),    # w2
        pl.BlockSpec((1, hidden2), lambda i: (0, 0)),         # b2
        pl.BlockSpec((hidden2, out_pad), lambda i: (0, 0)),   # w3 (lane-padded)
        pl.BlockSpec((1, out_pad), lambda i: (0, 0)),         # b3 (lane-padded)
    ]
    out_specs = pl.BlockSpec((tb, out_pad), lambda i: (i, 0))

    out_padded = pl.pallas_call(
        mlp_encoder_kernel,
        out_shape=jax.ShapeDtypeStruct((B_pad, out_pad), x.dtype),
        grid_spec=pltpu.PrefetchScalarGridSpec(
            num_scalar_prefetch=0,
            grid=grid,
            in_specs=in_specs,
            out_specs=out_specs,
        ),
        compiler_params=pltpu.CompilerParams(
            dimension_semantics=("parallel",),   # batch tiles shard across v7x's 2 TCs
            vmem_limit_bytes=vmem_limit,
        ),
        cost_estimate=pl.CostEstimate(
            flops=int(flops), transcendentals=0, bytes_accessed=int(bytes_accessed)),
    )(x, w1, b1, w2, b2, w3, b3)

    # Drop batch padding and the zero lane padding of the output.
    return out_padded[:B, :out_dim]


def init_params(key, state_dim, hidden_dim, out_dim, dtype=jnp.float32):
    """Synthetic init matching nn.Linear shapes (W [out,in] stored transposed as [in,out])."""
    ks = jax.random.split(key, 6)

    def linear(kw, kb, fan_in, fan_out):
        bound = 1.0 / jnp.sqrt(fan_in)
        w = jax.random.uniform(kw, (fan_in, fan_out), dtype, -bound, bound)
        b = jax.random.uniform(kb, (1, fan_out), dtype, -bound, bound)
        return w, b

    w1, b1 = linear(ks[0], ks[1], state_dim, hidden_dim)
    w2, b2 = linear(ks[2], ks[3], hidden_dim, hidden_dim * 2)
    w3, b3 = linear(ks[4], ks[5], hidden_dim * 2, out_dim)
    return {"w1": w1, "b1": b1, "w2": w2, "b2": b2, "w3": w3, "b3": b3}


def mlp_encoder_ref(x, p):
    """Pure-JAX reference emulating the kernel's precision (bf16 operands, f32 accumulate)."""
    w1 = p["w1"].astype(jnp.bfloat16)
    w2 = p["w2"].astype(jnp.bfloat16)
    w3 = p["w3"].astype(jnp.bfloat16)
    h1 = _leaky_relu(jnp.dot(x.astype(jnp.bfloat16), w1,
                             preferred_element_type=jnp.float32) + p["b1"])
    h2 = _leaky_relu(jnp.dot(h1.astype(jnp.bfloat16), w2,
                             preferred_element_type=jnp.float32) + p["b2"])
    return jnp.dot(h2.astype(jnp.bfloat16), w3,
                   preferred_element_type=jnp.float32) + p["b3"]


if __name__ == "__main__":
    key = jax.random.PRNGKey(0)
    k_x, k_p = jax.random.split(key)

    batch, state_dim, hidden_dim, out_dim = 512, 16, 32, 8

    x = jax.random.normal(k_x, (batch, state_dim), jnp.float32)
    params = init_params(k_p, state_dim, hidden_dim, out_dim)

    # Tiled path: tile_batch=256 -> grid=(2,) pipelined / TC-parallel steps.
    out = jax.block_until_ready(mlp_encoder(x, params))
    ref = mlp_encoder_ref(x, params)
    assert out.shape == (batch, out_dim)
    assert jnp.allclose(out, ref, atol=1e-2, rtol=1e-2), "mismatch vs reference (tiled)"

    # Ragged batch exercising the batch-pad + output-slice path.
    x2 = jax.random.normal(k_x, (37, state_dim), jnp.float32)
    out2 = jax.block_until_ready(mlp_encoder(x2, params))
    ref2 = mlp_encoder_ref(x2, params)
    assert out2.shape == (37, out_dim)
    assert jnp.allclose(out2, ref2, atol=1e-2, rtol=1e-2), "mismatch vs reference (ragged)"

    print("KERNEL_OK")
</pallas_src>

<mosaic_0001>
module attributes {stable_mosaic.version = 11 : i64} {
  func.func @mlp_encoder_kernel(%arg0: i32, %arg1: memref<256x16xf32, #tpu.memory_space<vmem>>, %arg2: memref<16x32xbf16, #tpu.memory_space<vmem>>, %arg3: memref<1x32xf32, #tpu.memory_space<vmem>>, %arg4: memref<32x64xbf16, #tpu.memory_space<vmem>>, %arg5: memref<1x64xf32, #tpu.memory_space<vmem>>, %arg6: memref<64x128xbf16, #tpu.memory_space<vmem>>, %arg7: memref<1x128xf32, #tpu.memory_space<vmem>>, %arg8: memref<256x128xf32, #tpu.memory_space<vmem>>) attributes {dimension_semantics = [#tpu.dimension_semantics<parallel>], iteration_bounds = array<i64: 2>, scalar_prefetch = 0 : i64, scratch_operands = 0 : i64, tpu.core_type = #tpu.core_type<tc>, window_params = [{transform_indices = @transform_0, window_bounds = array<i64: 256, 16>}, {pipeline_mode = #tpu.pipeline_mode<synchronous>, transform_indices = @transform_1, window_bounds = array<i64: 16, 32>}, {pipeline_mode = #tpu.pipeline_mode<synchronous>, transform_indices = @transform_2, window_bounds = array<i64: 1, 32>}, {pipeline_mode = #tpu.pipeline_mode<synchronous>, transform_indices = @transform_3, window_bounds = array<i64: 32, 64>}, {pipeline_mode = #tpu.pipeline_mode<synchronous>, transform_indices = @transform_4, window_bounds = array<i64: 1, 64>}, {pipeline_mode = #tpu.pipeline_mode<synchronous>, transform_indices = @transform_5, window_bounds = array<i64: 64, 128>}, {pipeline_mode = #tpu.pipeline_mode<synchronous>, transform_indices = @transform_6, window_bounds = array<i64: 1, 128>}, {transform_indices = @transform_7, window_bounds = array<i64: 256, 128>}]} {
    %c0 = arith.constant 0 : index
    %c0_0 = arith.constant 0 : index
    %0 = vector.load %arg1[%c0, %c0_0] : memref<256x16xf32, #tpu.memory_space<vmem>>, vector<256x16xf32>
    %1 = arith.truncf %0 : vector<256x16xf32> to vector<256x16xbf16>
    %c0_1 = arith.constant 0 : index
    %c0_2 = arith.constant 0 : index
    %2 = vector.load %arg2[%c0_1, %c0_2] : memref<16x32xbf16, #tpu.memory_space<vmem>>, vector<16x32xbf16>
    %cst = arith.constant dense<0.000000e+00> : vector<256x32xf32>
    %3 = tpu.matmul %1, %2, %cst {dimension_numbers = #tpu.dot_dimension_numbers<[1], [0], [0], [1], [0, 0, 1, 1], [], []>} : vector<256x16xbf16>, vector<16x32xbf16>, vector<256x32xf32> -> vector<256x32xf32>
    %c0_3 = arith.constant 0 : index
    %c0_4 = arith.constant 0 : index
    %4 = vector.load %arg3[%c0_3, %c0_4] : memref<1x32xf32, #tpu.memory_space<vmem>>, vector<1x32xf32>
    %5 = vector.broadcast %4 : vector<1x32xf32> to vector<256x32xf32>
    %6 = arith.addf %3, %5 : vector<256x32xf32>
    %cst_5 = arith.constant 0.000000e+00 : f32
    %7 = vector.broadcast %cst_5 : f32 to vector<256x32xf32>
    %8 = arith.cmpf ogt, %6, %7 : vector<256x32xf32>
    %cst_6 = arith.constant 0.00999999977 : f32
    %9 = vector.broadcast %cst_6 : f32 to vector<256x32xf32>
    %10 = arith.mulf %9, %6 : vector<256x32xf32>
    %11 = arith.select %8, %6, %10 : vector<256x32xi1>, vector<256x32xf32>
    %12 = arith.truncf %11 : vector<256x32xf32> to vector<256x32xbf16>
    %c0_7 = arith.constant 0 : index
    %c0_8 = arith.constant 0 : index
    %13 = vector.load %arg4[%c0_7, %c0_8] : memref<32x64xbf16, #tpu.memory_space<vmem>>, vector<32x64xbf16>
    %cst_9 = arith.constant dense<0.000000e+00> : vector<256x64xf32>
    %14 = tpu.matmul %12, %13, %cst_9 {dimension_numbers = #tpu.dot_dimension_numbers<[1], [0], [0], [1], [0, 0, 1, 1], [], []>} : vector<256x32xbf16>, vector<32x64xbf16>, vector<256x64xf32> -> vector<256x64xf32>
    %c0_10 = arith.constant 0 : index
    %c0_11 = arith.constant 0 : index
    %15 = vector.load %arg5[%c0_10, %c0_11] : memref<1x64xf32, #tpu.memory_space<vmem>>, vector<1x64xf32>
    %16 = vector.broadcast %15 : vector<1x64xf32> to vector<256x64xf32>
    %17 = arith.addf %14, %16 : vector<256x64xf32>
    %cst_12 = arith.constant 0.000000e+00 : f32
    %18 = vector.broadcast %cst_12 : f32 to vector<256x64xf32>
    %19 = arith.cmpf ogt, %17, %18 : vector<256x64xf32>
    %cst_13 = arith.constant 0.00999999977 : f32
    %20 = vector.broadcast %cst_13 : f32 to vector<256x64xf32>
    %21 = arith.mulf %20, %17 : vector<256x64xf32>
    %22 = arith.select %19, %17, %21 : vector<256x64xi1>, vector<256x64xf32>
    %23 = arith.truncf %22 : vector<256x64xf32> to vector<256x64xbf16>
    %c0_14 = arith.constant 0 : index
    %c0_15 = arith.constant 0 : index
    %24 = vector.load %arg6[%c0_14, %c0_15] : memref<64x128xbf16, #tpu.memory_space<vmem>>, vector<64x128xbf16>
    %cst_16 = arith.constant dense<0.000000e+00> : vector<256x128xf32>
    %25 = tpu.matmul %23, %24, %cst_16 {dimension_numbers = #tpu.dot_dimension_numbers<[1], [0], [0], [1], [0, 0, 1, 1], [], []>} : vector<256x64xbf16>, vector<64x128xbf16>, vector<256x128xf32> -> vector<256x128xf32>
    %c0_17 = arith.constant 0 : index
    %c0_18 = arith.constant 0 : index
    %26 = vector.load %arg7[%c0_17, %c0_18] : memref<1x128xf32, #tpu.memory_space<vmem>>, vector<1x128xf32>
    %27 = vector.broadcast %26 : vector<1x128xf32> to vector<256x128xf32>
    %28 = arith.addf %25, %27 : vector<256x128xf32>
    %c0_19 = arith.constant 0 : index
    %c0_20 = arith.constant 0 : index
    %29 = vector.load %arg8[%c0_19, %c0_20] : memref<256x128xf32, #tpu.memory_space<vmem>>, vector<256x128xf32>
    tpu.vector_store %arg8[%c0_19, %c0_20], %28 {strides = array<i32>} : memref<256x128xf32, #tpu.memory_space<vmem>>, vector<256x128xf32>,
    return
  }
  func.func @transform_0(%arg0: i32) -> (i32, i32) {
    %c0_i32 = arith.constant 0 : i32
    %c0_i32_0 = arith.constant 0 : i32
    return %arg0, %c0_i32 : i32, i32
  }
  func.func @transform_1(%arg0: i32) -> (i32, i32) {
    %c0_i32 = arith.constant 0 : i32
    %c0_i32_0 = arith.constant 0 : i32
    %c0_i32_1 = arith.constant 0 : i32
    return %c0_i32, %c0_i32_0 : i32, i32
  }
  func.func @transform_2(%arg0: i32) -> (i32, i32) {
    %c0_i32 = arith.constant 0 : i32
    %c0_i32_0 = arith.constant 0 : i32
    %c0_i32_1 = arith.constant 0 : i32
    return %c0_i32, %c0_i32_0 : i32, i32
  }
  func.func @transform_3(%arg0: i32) -> (i32, i32) {
    %c0_i32 = arith.constant 0 : i32
    %c0_i32_0 = arith.constant 0 : i32
    %c0_i32_1 = arith.constant 0 : i32
    return %c0_i32, %c0_i32_0 : i32, i32
  }
  func.func @transform_4(%arg0: i32) -> (i32, i32) {
    %c0_i32 = arith.constant 0 : i32
    %c0_i32_0 = arith.constant 0 : i32
    %c0_i32_1 = arith.constant 0 : i32
    return %c0_i32, %c0_i32_0 : i32, i32
  }
  func.func @transform_5(%arg0: i32) -> (i32, i32) {
    %c0_i32 = arith.constant 0 : i32
    %c0_i32_0 = arith.constant 0 : i32
    %c0_i32_1 = arith.constant 0 : i32
    return %c0_i32, %c0_i32_0 : i32, i32
  }
  func.func @transform_6(%arg0: i32) -> (i32, i32) {
    %c0_i32 = arith.constant 0 : i32
    %c0_i32_0 = arith.constant 0 : i32
    %c0_i32_1 = arith.constant 0 : i32
    return %c0_i32, %c0_i32_0 : i32, i32
  }
  func.func @transform_7(%arg0: i32) -> (i32, i32) {
    %c0_i32 = arith.constant 0 : i32
    %c0_i32_0 = arith.constant 0 : i32
    return %arg0, %c0_i32 : i32, i32
  }
}

</mosaic_0001>

<bundles_post_ra>
// kernel: tpu_custom_call.1
= control target key start
LH: loop header
LB: loop body
LE: loop exit
PB: predicated region body
PF: predicated region fallthrough
CT: control target
= control target key end

     0   :  { %12 = vsyncpa [#allocation3], 0  ;;  %s2147_s0 = inlined_call_operand.vmem [shape: f32[512,16], index: 0, kind: input, shape index: {}]   ;;  %s2148_s1 = inlined_call_operand.vmem [shape: bf16[16,32], index: 1, kind: input, shape index: {}]   ;;  %s2149_s2 = inlined_call_operand.vmem [shape: f32[1,32], index: 2, kind: input, shape index: {}]   ;;  %s2150_s3 = inlined_call_operand.vmem [shape: bf16[32,64], index: 3, kind: input, shape index: {}]   ;;  %s2151_s4 = inlined_call_operand.vmem [shape: f32[1,64], index: 4, kind: input, shape index: {}]   ;;  %s2152_s5 = inlined_call_operand.vmem [shape: bf16[64,128], index: 5, kind: input, shape index: {}]   ;;  %s2153_s6 = inlined_call_operand.vmem [shape: f32[1,128], index: 6, kind: input, shape index: {}]   ;;  %s2154_s7 = inlined_call_operand.hbm [shape: f32[512,128], index: 7, kind: output, shape index: {}]  }
   0x1   :  { %14 = vsyncpa [#allocation3 + $0x1], 0  ;;  %s1761_s24 = smov 0   ;;  %s1763_s25 = smov 0  }
   0x2   :  { %s1765_s26 = smov 0   ;;  %s1767_s27 = smov 0  }
   0x3 LB: > { %s1782_s28 = sadd.s32 4294967295, %s1716_s27   ;;  %s1368_s29 = sadd.s32 4294967294, %s1716_s27   ;;  %s1716_s27 = sphi %s1767_s27, %s2160_s27   ;;  %s1712_s26 = sphi %s1765_s26, %s2159_s26   ;;  %s1708_s25 = sphi %s1763_s25, %s2158_s25   ;;  %s1704_s24 = sphi %s1761_s24, %s2157_s24  }
   0x4   : > { %s1786_s30 = sadd.s32 1, %s1716_s27   ;;  %s179_s8 = sadd.s32 1, %s1712_s26 }
   0x5   : > { %s176_s9 = ssub.s32 %s1716_s27, %s1786_s30  ;;  %p189_p0 = scmp.ne.s32.totalorder %s1712_s26, %s1708_s25 }
   0x6   : > { %p177_p1 = scmp.eq.s32.totalorder %s176_s9, 0  ;;  %p190_p2 = scmp.eq.s32.totalorder %s1782_s28, 1 }
   0x7   : > { %p195_p3 = scmp.ne.s32.totalorder %s1708_s25, %s1704_s24  ;;  %p196_p4 = scmp.eq.s32.totalorder %s1368_s29, 1 }
   0x8   : > { %s1797_s10 = scalar_select %p177_p1, %s1712_s26, %s179_s8  }
   0x9   : > { %p1799_p5 = por %p190_p2, %p189_p0  ;;  %p1803_p6 = por %p196_p4, %p195_p3 }
   0xa   : > { %p1371_p7 = scmp.ge.s32.totalorder %s1716_s27, 1  ;;  %p241_p8 = scmp.lt.s32.totalorder %s1716_s27, 3 }
   0xc   : > { %p242_p9 = pnand %p1371_p7, %p241_p8 }
   0xd   : > { %v1647_v0 = vld [vmem:[%s2148_s1] sm:$0xff] (!%p242_p9)   ;;  %s1373_s15 = sshll.u32 (!%p242_p9), %s1782_s28, 5  ;;  %vm344_vm0 = vcmask (!%p242_p9), 130048   ;;  %v1649_v23 = vld [vmem:[%s2150_s3 + $0x8] sm:$0xff] (!%p242_p9)   ;;  %v1652_v53 = vld [vmem:[%s2152_s5 + $0x10] sm:$0xff] (!%p242_p9)   ;;  %vm689_vm5 = vcmask (!%p242_p9), 261120  }
   0xe   : > { %245 = sbr.rel (%p242_p9) target bundleno = 762 (0x2fa), region = 48  ;;  %p274_p10 = scmp.lt.s32.totalorder (!%p242_p9), %s1373_s15, 63  ;;  %1494 = vmatprep.subr.bf16.mxu0 (!%p242_p9), %v1647_v0  ;;  %1604 = vmatprep.subr.bf16.mxu1 (!%p242_p9), %v1647_v0  ;;  %v1648_v1 = vld [vmem:[%s2150_s3] sm:$0xff] (!%p242_p9)   ;;  %v1651_v52 = vld [vmem:[%s2152_s5 + $0x8] sm:$0xff] (!%p242_p9)  }
   0xf   : > { %1495 = vmatpush3.bf16.msra.mxu0 (!%p242_p9), %v1647_v0  ;;  %1605 = vmatpush3.bf16.msra.mxu1 (!%p242_p9), %v1647_v0  ;;  %v1650_v51 = vld [vmem:[%s2152_s5] sm:$0xff] (!%p242_p9)   ;;  %s270_s22 = sand.u32 (!%p242_p9), 1, %s1708_s25   ;;  %s1438_s13 = sshll.u32 (!%p242_p9), %s1782_s28, 12 }
  0x10   : > { %1528 = vmatprep.subr.bf16.mxu1 (!%p242_p9), %v1648_v1  ;;  %1564 = vmatprep.subr.bf16.mxu0 (!%p242_p9), %v1650_v51  ;;  %v1884_v54 = vld [vmem:[%s2149_s2] ss:$0 sm:$0xff] (!%p242_p9)  ;;  %s1372_s23 = sshll.u32 (!%p242_p9), %s270_s22, 8  ;;  %s2096_s17 = scalar_lea.hbm (!%p242_p9), %s2154_s7, %s1438_s13 }
  0x11   : > { %s2031_s9 = scalar_lea.vmem (!%p242_p9), [#allocation2], %s1372_s23  ;;  %s2106_s28 = scalar_lea.sflag (!%p242_p9), [#allocation3], %s270_s22 }
  0x12   : > { %s1306_s14 = sshll.u32 (!%p242_p9), %s2031_s9, 4  ;;  %s1718_s19 = smov (!%p242_p9), [#allocation2]   ;;  %s2098_s14 = int_to_ptr.vmem [resolvable:$true] %s1306_s14 }
  0x13   : > { %s1658_s20 = sshll.u32 (!%p242_p9), %s1718_s19, 4  ;;  %s1659_s20 = int_to_ptr.vmem [resolvable:$false] %s1658_s20 }
  0x14   : > { %p1661_p0 = scmp.lt.s32.totalorder (!%p242_p9), %s2098_s14, %s1659_s20 }
  0x15   : > { %s2162_s15 = smov (!%p274_p10, %s1373_s15), 63 }
  0x16   : > { %s1374_s18 = sshll.u32 %s2162_s15, 3 }
  0x17   : > { %s1819_s21 = scalar_lea.vmem %s2147_s0, %s1374_s18  ;;  %s1654_s18 = scalar_lea.vmem %s2098_s14, 4096 }
  0x18   : > { %v281_v2 = vld [vmem:[%s1819_s21] sm:$0xff]  ;;  %v282_v3 = vld [vmem:[%s1819_s21 + $0x8] sm:$0xff]  ;;  %v283_v4 = vld [vmem:[%s1819_s21 + $0x10] sm:$0xff]  ;;  %p1655_p11 = scmp.ne.s32.totalorder %s2098_s14, %s1654_s18 }
  0x19   : > { %v313_v5 = vpack.c.bf16 %v282_v3, %v281_v2  ;;  %v284_v6 = vld [vmem:[%s1819_s21 + $0x18] sm:$0xff]  ;;  %v285_v7 = vld [vmem:[%s1819_s21 + $0x20] sm:$0xff]  ;;  %v286_v8 = vld [vmem:[%s1819_s21 + $0x28] sm:$0xff] }
  0x1a   : > { %v314_v9 = vpack.c.bf16 %v284_v6, %v283_v4  ;;  %v315_v10 = vpack.c.bf16 %v286_v8, %v285_v7  ;;  %v287_v11 = vld [vmem:[%s1819_s21 + $0x30] sm:$0xff]  ;;  %v288_v12 = vld [vmem:[%s1819_s21 + $0x38] sm:$0xff]  ;;  %v289_v13 = vld [vmem:[%s1819_s21 + $0x40] sm:$0xff]  ;;  %p1656_p12 = pnand %p1655_p11, %p1799_p5 }
  0x1b   : > { %1496 = vmatprep.mubr.msk.bf16.mxu0 %vm344_vm0, %v313_v5  ;;  %v290_v14 = vld [vmem:[%s1819_s21 + $0x48] sm:$0xff]  ;;  %v297_v15 = vld [vmem:[%s1819_s21 + $0x80] sm:$0xff]  ;;  %v299_v18 = vld [vmem:[%s1819_s21 + $0x90] sm:$0xff]  ;;  %v316_v24 = vpack.c.bf16 %v288_v12, %v287_v11 }
  0x1c   : > { %1497 = vmatmul.mubr.msk.bf16.vlgmr.msra.gmra.mrb[0].mxu0 %vm344_vm0, %v314_v9  ;;  %v298_v16 = vld [vmem:[%s1819_s21 + $0x88] sm:$0xff]  ;;  %v300_v19 = vld [vmem:[%s1819_s21 + $0x98] sm:$0xff]  ;;  %v301_v20 = vld [vmem:[%s1819_s21 + $0xa0] sm:$0xff]  ;;  %v317_v26 = vpack.c.bf16 %v290_v14, %v289_v13  ;;  %p1657_p13 = pneg %p1656_p12 }
  0x1d   : > { %1500 = vmatprep.mubr.msk.bf16.mxu0 %vm344_vm0, %v315_v10  ;;  %v321_v17 = vpack.c.bf16 %v298_v16, %v297_v15  ;;  %v322_v21 = vpack.c.bf16 %v300_v19, %v299_v18  ;;  %v302_v22 = vld [vmem:[%s1819_s21 + $0xa8] sm:$0xff]  ;;  %v303_v27 = vld [vmem:[%s1819_s21 + $0xb0] sm:$0xff]  ;;  %v304_v28 = vld [vmem:[%s1819_s21 + $0xb8] sm:$0xff]  ;;  %1565 = vmatpush3.bf16.msra.mxu0 %v1650_v51 }
  0x1e   : > { %v323_v25 = vpack.c.bf16 %v302_v22, %v301_v20  ;;  %v305_v29 = vld [vmem:[%s1819_s21 + $0xc0] sm:$0xff]  ;;  %v306_v30 = vld [vmem:[%s1819_s21 + $0xc8] sm:$0xff]  ;;  %v291_v31 = vld [vmem:[%s1819_s21 + $0x50] sm:$0xff]  ;;  %v324_v33 = vpack.c.bf16 %v304_v28, %v303_v27  ;;  %1566 = vmatprep.subr.bf16.mxu0 %v1651_v52 }
  0x1f   : > { %1512 = vmatprep.mubr.msk.bf16.mxu1 %vm344_vm0, %v321_v17  ;;  %v292_v32 = vld [vmem:[%s1819_s21 + $0x58] sm:$0xff]  ;;  %v293_v34 = vld [vmem:[%s1819_s21 + $0x60] sm:$0xff]  ;;  %v294_v35 = vld [vmem:[%s1819_s21 + $0x68] sm:$0xff]  ;;  %v325_v36 = vpack.c.bf16 %v306_v30, %v305_v29 }
  0x20   : > { %1513 = vmatmul.mubr.msk.bf16.vlgmr.msra.gmra.mrb[0].mxu1 %vm344_vm0, %v322_v21  ;;  %v318_v37 = vpack.c.bf16 %v292_v32, %v291_v31  ;;  %v319_v38 = vpack.c.bf16 %v294_v35, %v293_v34  ;;  %v307_v39 = vld [vmem:[%s1819_s21 + $0xd0] sm:$0xff]  ;;  %v308_v40 = vld [vmem:[%s1819_s21 + $0xd8] sm:$0xff]  ;;  %v309_v41 = vld [vmem:[%s1819_s21 + $0xe0] sm:$0xff] }
  0x21   : > { %1516 = vmatprep.mubr.msk.bf16.mxu1 %vm344_vm0, %v323_v25  ;;  %1529 = vmatpush3.bf16.msra.mxu1 %v1648_v1  ;;  %v310_v42 = vld [vmem:[%s1819_s21 + $0xe8] sm:$0xff]  ;;  %v295_v43 = vld [vmem:[%s1819_s21 + $0x70] sm:$0xff]  ;;  %v296_v44 = vld [vmem:[%s1819_s21 + $0x78] sm:$0xff]  ;;  %v326_v45 = vpack.c.bf16 %v308_v40, %v307_v39 }
  0x22   : > { %1530 = vmatprep.subr.bf16.mxu1 %v1649_v23  ;;  %v327_v46 = vpack.c.bf16 %v310_v42, %v309_v41  ;;  %v320_v47 = vpack.c.bf16 %v296_v44, %v295_v43  ;;  %v311_v48 = vld [vmem:[%s1819_s21 + $0xf0] sm:$0xff]  ;;  %v312_v49 = vld [vmem:[%s1819_s21 + $0xf8] sm:$0xff]  ;;  %1567 = vmatpush3.bf16.msra.mxu0 %v1651_v52  ;;  %s1660_s21 = scalar_lea.vmem %s1659_s20, 8192 }
  0x23   : > { %v328_v50 = vpack.c.bf16 %v312_v49, %v311_v48  ;;  %1568 = vmatprep.subr.bf16.mxu0 %v1652_v53  ;;  %p1662_p1 = scmp.lt.s32.totalorder %s1660_s21, %s1654_s18 }
  0x24   : > { %1501 = vmatmul.mubr.msk.bf16.gmra.mrb[4].mxu0 %vm344_vm0, %v316_v24 }
  0x25   : > { %1504 = vmatprep.mubr.msk.bf16.mxu0 %vm344_vm0, %v317_v26  ;;  %1531 = vmatpush3.bf16.msra.mxu1 %v1649_v23  ;;  %p1663_p2 = por %p1662_p1, %p1661_p0 }
  0x26   : > { %1569 = vmatpush3.bf16.msra.mxu0 %v1652_v53 }
  0x27   : > { %p1664_p3 = pnand %p1663_p2, %p1657_p13 }
  0x28   : > { %1517 = vmatmul.mubr.msk.bf16.gmra.mrb[4].mxu1 %vm344_vm0, %v324_v33 }
  0x29   : > { %1520 = vmatprep.mubr.msk.bf16.mxu1 %vm344_vm0, %v325_v36 }
  0x2c   : > { %1505 = vmatmul.mubr.msk.bf16.gmra.mrb[8].mxu0 %vm344_vm0, %v318_v37 }
  0x2d   : > { %1508 = vmatprep.mubr.msk.bf16.mxu0 %vm344_vm0, %v319_v38 }
  0x30   : > { %1521 = vmatmul.mubr.msk.bf16.gmra.mrb[8].mxu1 %vm344_vm0, %v326_v45 }
  0x31   : > { %1524 = vmatprep.mubr.msk.bf16.mxu1 %vm344_vm0, %v327_v46 }
  0x34   : > { %1509 = vmatmul.mubr.msk.bf16.gmra.mrb[12].mxu0 %vm344_vm0, %v320_v47 }
  0x38   : > { %1525 = vmatmul.mubr.msk.bf16.gmra.mrb[12].mxu1 %vm344_vm0, %v328_v50 }
  0xef   : > { %v1498_v55 = vpop.f32.mrb[0].mxu0 }
  0xf0   : > { %v436_v56 = vadd.f32 %v1498_v55, %v1884_v54  ;;  %v427_v57 = vpop.f32.mrb[1].mxu0 }
  0xf1   : > { %v428_v58 = vadd.f32 %v1884_v54, %v427_v57  ;;  %v1499_v59 = vpop.f32.mrb[2].mxu0 }
  0xf2   : > { %v588_v60 = vmul.f32 0.01, %v436_v56  ;;  %v439_v61 = vadd.f32 %v1499_v59, %v1884_v54  ;;  %v430_v62 = vpop.f32.mrb[3].mxu0  ;;  %vm556_vm1 = vcmp.gt.f32.partialorder %v436_v56, 0.0 }
  0xf3   : > { %vm554_vm2 = vcmp.gt.f32.partialorder %v428_v58, 0.0  ;;  %v586_v63 = vmul.f32 0.01, %v428_v58  ;;  %v431_v0 = vadd.f32 %v1884_v54, %v430_v62  ;;  %v1514_v2 = vpop.f32.mrb[0].mxu1 }
  0xf4   : > { %vm557_vm3 = vcmp.gt.f32.partialorder %v439_v61, 0.0  ;;  %v589_v1 = vmul.f32 0.01, %v439_v61  ;;  %v500_v4 = vadd.f32 %v1514_v2, %v1884_v54  ;;  %v491_v5 = vpop.f32.mrb[1].mxu1  ;;  %v620_v6 = vsel %vm556_vm1, %v436_v56, %v588_v60 }
  0xf5   : > { %vm555_vm4 = vcmp.gt.f32.partialorder %v431_v0, 0.0  ;;  %v587_v3 = vmul.f32 0.01, %v431_v0  ;;  %v618_v7 = vsel %vm554_vm2, %v428_v58, %v586_v63  ;;  %v492_v9 = vadd.f32 %v1884_v54, %v491_v5  ;;  %v1515_v10 = vpop.f32.mrb[2].mxu1 }
  0xf6   : > { %v621_v8 = vsel %vm557_vm3, %v439_v61, %v589_v1  ;;  %vm572_vm6 = vcmp.gt.f32.partialorder %v500_v4, 0.0  ;;  %v604_v14 = vmul.f32 0.01, %v500_v4  ;;  %v494_v15 = vpop.f32.mrb[3].mxu1  ;;  %v503_v23 = vadd.f32 %v1515_v10, %v1884_v54 }
  0xf7   : > { %v651_v11 = vpack.c.bf16 %v621_v8, %v620_v6  ;;  %v619_v12 = vsel %vm555_vm4, %v431_v0, %v587_v3  ;;  %v1502_v13 = vpop.f32.mrb[4].mxu0  ;;  %vm570_vm7 = vcmp.gt.f32.partialorder %v492_v9, 0.0  ;;  %v602_v19 = vmul.f32 0.01, %v492_v9 }
  0xf8   : > { %v650_v16 = vpack.c.bf16 %v619_v12, %v618_v7  ;;  %v452_v17 = vadd.f32 %v1502_v13, %v1884_v54  ;;  %v443_v18 = vpop.f32.mrb[5].mxu0  ;;  %v1894_v22 = vsel %vm572_vm6, %v500_v4, %v604_v14  ;;  %v495_v24 = vadd.f32 %v1884_v54, %v494_v15 }
  0xf9   : > { %v444_v20 = vadd.f32 %v1884_v54, %v443_v18  ;;  %v1503_v21 = vpop.f32.mrb[6].mxu0  ;;  %v1900_v28 = vsel %vm570_vm7, %v492_v9, %v602_v19  ;;  %vm573_vm10 = vcmp.gt.f32.partialorder %v503_v23, 0.0  ;;  %v605_v33 = vmul.f32 0.01, %v503_v23 }
  0xfa   : > { %vm560_vm8 = vcmp.gt.f32.partialorder %v452_v17, 0.0  ;;  %v592_v25 = vmul.f32 0.01, %v452_v17  ;;  %v455_v26 = vadd.f32 %v1503_v21, %v1884_v54  ;;  %v446_v27 = vpop.f32.mrb[7].mxu0  ;;  %1532 = vmatprep.mubr.msk.bf16.mxu1 %vm689_vm5, %v650_v16  ;;  %vm571_vm13 = vcmp.gt.f32.partialorder %v495_v24, 0.0 }
  0xfb   : > { %vm558_vm9 = vcmp.gt.f32.partialorder %v444_v20, 0.0  ;;  %v590_v29 = vmul.f32 0.01, %v444_v20  ;;  %v447_v30 = vadd.f32 %v1884_v54, %v446_v27  ;;  %1533 = vmatmul.mubr.msk.bf16.vlgmr.msra.gmra.mrb[16].mxu1 %vm689_vm5, %v651_v11  ;;  %v1518_v34 = vpop.f32.mrb[4].mxu1  ;;  %v1904_v39 = vsel %vm573_vm10, %v503_v23, %v605_v33 }
  0xfc   : > { %v624_v31 = vsel %vm560_vm8, %v452_v17, %v592_v25  ;;  %vm561_vm11 = vcmp.gt.f32.partialorder %v455_v26, 0.0  ;;  %v593_v32 = vmul.f32 0.01, %v455_v26  ;;  %v507_v37 = vpop.f32.mrb[5].mxu1  ;;  %v603_v40 = vmul.f32 0.01, %v495_v24 }
  0xfd   : > { %v622_v35 = vsel %vm558_vm9, %v444_v20, %v590_v29  ;;  %vm559_vm12 = vcmp.gt.f32.partialorder %v447_v30, 0.0  ;;  %v591_v36 = vmul.f32 0.01, %v447_v30  ;;  %v516_v41 = vadd.f32 %v1518_v34, %v1884_v54  ;;  %v1519_v42 = vpop.f32.mrb[6].mxu1 }
  0xfe   : > { %v625_v38 = vsel %vm561_vm11, %v455_v26, %v593_v32  ;;  %v659_v46 = vpack.c.bf16 %v1904_v39, %v1894_v22  ;;  %v508_v47 = vadd.f32 %v1884_v54, %v507_v37  ;;  %v510_v48 = vpop.f32.mrb[7].mxu1  ;;  %v1912_v52 = vsel %vm571_vm13, %v495_v24, %v603_v40  ;;  %v1971_v22 = vld [vmem:[%s2151_s4] ss:$0 sm:$0xff] }
  0xff   : > { %v653_v43 = vpack.c.bf16 %v625_v38, %v624_v31  ;;  %v623_v44 = vsel %vm559_vm12, %v447_v30, %v591_v36  ;;  %v1506_v45 = vpop.f32.mrb[8].mxu0  ;;  %vm576_vm14 = vcmp.gt.f32.partialorder %v516_v41, 0.0  ;;  %v658_v56 = vpack.c.bf16 %v1912_v52, %v1900_v28  ;;  %v1653_v28 = vld [vmem:[%s2152_s5 + $0x18] sm:$0xff]  }
 0x100   : > { %v652_v49 = vpack.c.bf16 %v623_v44, %v622_v35  ;;  %v468_v50 = vadd.f32 %v1506_v45, %v1884_v54  ;;  %v459_v51 = vpop.f32.mrb[9].mxu0  ;;  %v608_v57 = vmul.f32 0.01, %v516_v41  ;;  %vm574_vm15 = vcmp.gt.f32.partialorder %v508_v47, 0.0  ;;  %1570 = vmatprep.subr.bf16.mxu0 %v1653_v28 }
 0x101   : > { %v460_v53 = vadd.f32 %v1884_v54, %v459_v51  ;;  %v1507_v55 = vpop.f32.mrb[10].mxu0  ;;  %v606_v61 = vmul.f32 0.01, %v508_v47  ;;  %v519_v7 = vadd.f32 %v1519_v42, %v1884_v54  ;;  %v511_v10 = vadd.f32 %v1884_v54, %v510_v48  ;;  %1571 = vmatpush3.bf16.msra.mxu0 %v1653_v28 }
 0x102   : > { %vm564_vm0 = vcmp.gt.f32.partialorder %v468_v50, 0.0  ;;  %v596_v58 = vmul.f32 0.01, %v468_v50  ;;  %v471_v59 = vadd.f32 %v1507_v55, %v1884_v54  ;;  %v462_v60 = vpop.f32.mrb[11].mxu0  ;;  %1536 = vmatprep.mubr.msk.bf16.mxu1 %vm689_vm5, %v652_v49  ;;  %v1922_v0 = vsel %vm576_vm14, %v516_v41, %v608_v57 }
 0x103   : > { %vm562_vm1 = vcmp.gt.f32.partialorder %v460_v53, 0.0  ;;  %v594_v62 = vmul.f32 0.01, %v460_v53  ;;  %v463_v63 = vadd.f32 %v1884_v54, %v462_v60  ;;  %1537 = vmatmul.mubr.msk.bf16.gmra.mrb[20].mxu1 %vm689_vm5, %v653_v43  ;;  %v1924_v3 = vsel %vm574_vm15, %v508_v47, %v606_v61  ;;  %v1522_v4 = vpop.f32.mrb[8].mxu1 }
 0x104   : > { %v628_v1 = vsel %vm564_vm0, %v468_v50, %v596_v58  ;;  %vm565_vm2 = vcmp.gt.f32.partialorder %v471_v59, 0.0  ;;  %v597_v2 = vmul.f32 0.01, %v471_v59  ;;  %v523_v8 = vpop.f32.mrb[9].mxu1  ;;  %v532_v11 = vadd.f32 %v1522_v4, %v1884_v54 }
 0x105   : > { %v626_v5 = vsel %vm562_vm1, %v460_v53, %v594_v62  ;;  %vm563_vm3 = vcmp.gt.f32.partialorder %v463_v63, 0.0  ;;  %v595_v6 = vmul.f32 0.01, %v463_v63  ;;  %v524_v12 = vadd.f32 %v1884_v54, %v523_v8  ;;  %v1523_v13 = vpop.f32.mrb[10].mxu1 }
 0x106   : > { %v629_v9 = vsel %vm565_vm2, %v471_v59, %v597_v2  ;;  %vm577_vm4 = vcmp.gt.f32.partialorder %v519_v7, 0.0  ;;  %v609_v17 = vmul.f32 0.01, %v519_v7  ;;  %v526_v18 = vpop.f32.mrb[11].mxu1  ;;  %vm575_vm6 = vcmp.gt.f32.partialorder %v511_v10, 0.0 }
 0x107   : > { %v655_v14 = vpack.c.bf16 %v629_v9, %v628_v1  ;;  %v627_v15 = vsel %vm563_vm3, %v463_v63, %v595_v6  ;;  %v1510_v16 = vpop.f32.mrb[12].mxu0  ;;  %v607_v23 = vmul.f32 0.01, %v511_v10  ;;  %vm580_vm7 = vcmp.gt.f32.partialorder %v532_v11, 0.0 }
 0x108   : > { %v654_v19 = vpack.c.bf16 %v627_v15, %v626_v5  ;;  %v484_v20 = vadd.f32 %v1510_v16, %v1884_v54  ;;  %v475_v21 = vpop.f32.mrb[13].mxu0  ;;  %v1932_v26 = vsel %vm577_vm4, %v519_v7, %v609_v17  ;;  %v612_v27 = vmul.f32 0.01, %v532_v11 }
 0x109   : > { %v476_v24 = vadd.f32 %v1884_v54, %v475_v21  ;;  %v1511_v25 = vpop.f32.mrb[14].mxu0  ;;  %v661_v32 = vpack.c.bf16 %v1932_v26, %v1922_v0  ;;  %v639_v35 = vsel %vm575_vm6, %v511_v10, %v607_v23  ;;  %vm578_vm12 = vcmp.gt.f32.partialorder %v524_v12, 0.0 }
 0x10a   : > { %vm568_vm8 = vcmp.gt.f32.partialorder %v484_v20, 0.0  ;;  %v600_v29 = vmul.f32 0.01, %v484_v20  ;;  %v487_v30 = vadd.f32 %v1511_v25, %v1884_v54  ;;  %v478_v31 = vpop.f32.mrb[15].mxu0  ;;  %1540 = vmatprep.mubr.msk.bf16.mxu1 %vm689_vm5, %v654_v19  ;;  %v660_v38 = vpack.c.bf16 %v639_v35, %v1924_v3 }
 0x10b   : > { %vm566_vm9 = vcmp.gt.f32.partialorder %v476_v24, 0.0  ;;  %v598_v33 = vmul.f32 0.01, %v476_v24  ;;  %v479_v34 = vadd.f32 %v1884_v54, %v478_v31  ;;  %1541 = vmatmul.mubr.msk.bf16.gmra.mrb[24].mxu1 %vm689_vm5, %v655_v14  ;;  %v1526_v40 = vpop.f32.mrb[12].mxu1  ;;  %v644_v43 = vsel %vm580_vm7, %v532_v11, %v612_v27 }
 0x10c   : > { %v632_v36 = vsel %vm568_vm8, %v484_v20, %v600_v29  ;;  %vm569_vm10 = vcmp.gt.f32.partialorder %v487_v30, 0.0  ;;  %v601_v37 = vmul.f32 0.01, %v487_v30  ;;  %v539_v44 = vpop.f32.mrb[13].mxu1  ;;  %v610_v47 = vmul.f32 0.01, %v524_v12 }
 0x10d   : > { %v630_v41 = vsel %vm566_vm9, %v476_v24, %v598_v33  ;;  %vm567_vm11 = vcmp.gt.f32.partialorder %v479_v34, 0.0  ;;  %v599_v42 = vmul.f32 0.01, %v479_v34  ;;  %v535_v48 = vadd.f32 %v1523_v13, %v1884_v54  ;;  %v1527_v49 = vpop.f32.mrb[14].mxu1 }
 0x10e   : > { %v633_v45 = vsel %vm569_vm10, %v487_v30, %v601_v37  ;;  %v527_v53 = vadd.f32 %v1884_v54, %v526_v18  ;;  %v548_v55 = vadd.f32 %v1526_v40, %v1884_v54  ;;  %v542_v57 = vpop.f32.mrb[15].mxu1  ;;  %v642_v59 = vsel %vm578_vm12, %v524_v12, %v610_v47 }
 0x10f   : > { %v657_v50 = vpack.c.bf16 %v633_v45, %v632_v36  ;;  %v631_v51 = vsel %vm567_vm11, %v479_v34, %v599_v42  ;;  %vm581_vm13 = vcmp.gt.f32.partialorder %v535_v48, 0.0  ;;  %v613_v60 = vmul.f32 0.01, %v535_v48 }
 0x110   : > { %v656_v58 = vpack.c.bf16 %v631_v51, %v630_v41  ;;  %vm579_vm14 = vcmp.gt.f32.partialorder %v527_v53, 0.0  ;;  %v611_v61 = vmul.f32 0.01, %v527_v53  ;;  %vm584_vm15 = vcmp.gt.f32.partialorder %v548_v55, 0.0 }
 0x111   : > { %v616_v62 = vmul.f32 0.01, %v548_v55  ;;  %v645_v63 = vsel %vm581_vm13, %v535_v48, %v613_v60  ;;  %v540_v0 = vadd.f32 %v1884_v54, %v539_v44  ;;  %v551_v1 = vadd.f32 %v1527_v49, %v1884_v54 }
 0x112   : > { %1544 = vmatprep.mubr.msk.bf16.mxu1 %vm689_vm5, %v656_v58  ;;  %v543_v2 = vadd.f32 %v1884_v54, %v542_v57  ;;  %v663_v3 = vpack.c.bf16 %v645_v63, %v644_v43  ;;  %v643_v4 = vsel %vm579_vm14, %v527_v53, %v611_v61  ;;  %vm1050_vm7 = vcmask 523264  }
 0x113   : > { %1545 = vmatmul.mubr.msk.bf16.gmra.mrb[28].mxu1 %vm689_vm5, %v657_v50  ;;  %v662_v5 = vpack.c.bf16 %v643_v4, %v642_v59  ;;  %vm582_vm0 = vcmp.gt.f32.partialorder %v540_v0, 0.0  ;;  %v614_v6 = vmul.f32 0.01, %v540_v0  ;;  %vm585_vm1 = vcmp.gt.f32.partialorder %v551_v1, 0.0 }
 0x114   : > { %1548 = vmatprep.mubr.msk.bf16.mxu1 %vm689_vm5, %v658_v56  ;;  %v648_v7 = vsel %vm584_vm15, %v548_v55, %v616_v62  ;;  %v617_v8 = vmul.f32 0.01, %v551_v1  ;;  %vm583_vm2 = vcmp.gt.f32.partialorder %v543_v2, 0.0  ;;  %v615_v9 = vmul.f32 0.01, %v543_v2 }
 0x115   : > { %v646_v10 = vsel %vm582_vm0, %v540_v0, %v614_v6 }
 0x116   : > { %v649_v11 = vsel %vm585_vm1, %v551_v1, %v617_v8  ;;  %v647_v54 = vsel %vm583_vm2, %v543_v2, %v615_v9 }
 0x117   : > { %v665_v12 = vpack.c.bf16 %v649_v11, %v648_v7  ;;  %v664_v13 = vpack.c.bf16 %v647_v54, %v646_v10 }
 0x11b   : > { %1549 = vmatmul.mubr.msk.bf16.gmra.mrb[32].mxu1 %vm689_vm5, %v659_v46 }
 0x11c   : > { %1552 = vmatprep.mubr.msk.bf16.mxu1 %vm689_vm5, %v660_v38 }
 0x123   : > { %1553 = vmatmul.mubr.msk.bf16.gmra.mrb[36].mxu1 %vm689_vm5, %v661_v32 }
 0x124   : > { %1556 = vmatprep.mubr.msk.bf16.mxu1 %vm689_vm5, %v662_v5 }
 0x12b   : > { %1557 = vmatmul.mubr.msk.bf16.gmra.mrb[40].mxu1 %vm689_vm5, %v663_v3 }
 0x12c   : > { %1560 = vmatprep.mubr.msk.bf16.mxu1 %vm689_vm5, %v664_v13 }
 0x133   : > { %1561 = vmatmul.mubr.msk.bf16.gmra.mrb[44].mxu1 %vm689_vm5, %v665_v12 }
 0x1ce   : > { %v1534_v39 = vpop.f32.mrb[16].mxu1 }
 0x1cf   : > { %v781_v46 = vadd.f32 %v1534_v39, %v1971_v22  ;;  %v772_v52 = vpop.f32.mrb[17].mxu1 }
 0x1d0   : > { %v773_v56 = vadd.f32 %v1971_v22, %v772_v52  ;;  %v1535_v14 = vpop.f32.mrb[18].mxu1 }
 0x1d1   : > { %v933_v15 = vmul.f32 0.01, %v781_v46  ;;  %v784_v16 = vadd.f32 %v1535_v14, %v1971_v22  ;;  %v775_v17 = vpop.f32.mrb[19].mxu1  ;;  %vm901_vm5 = vcmp.gt.f32.partialorder %v781_v46, 0.0 }
 0x1d2   : > { %v931_v18 = vmul.f32 0.01, %v773_v56  ;;  %v776_v19 = vadd.f32 %v1971_v22, %v775_v17  ;;  %vm899_vm3 = vcmp.gt.f32.partialorder %v773_v56, 0.0 }
 0x1d3   : > { %vm902_vm4 = vcmp.gt.f32.partialorder %v784_v16, 0.0  ;;  %v934_v20 = vmul.f32 0.01, %v784_v16  ;;  %v965_v23 = vsel %vm901_vm5, %v781_v46, %v933_v15 }
 0x1d4   : > { %vm900_vm6 = vcmp.gt.f32.partialorder %v776_v19, 0.0  ;;  %v932_v21 = vmul.f32 0.01, %v776_v19  ;;  %v963_v25 = vsel %vm899_vm3, %v773_v56, %v931_v18 }
 0x1d5   : > { %v966_v24 = vsel %vm902_vm4, %v784_v16, %v934_v20 }
 0x1d6   : > { %v996_v26 = vpack.c.bf16 %v966_v24, %v965_v23  ;;  %v964_v27 = vsel %vm900_vm6, %v776_v19, %v932_v21  ;;  %v1538_v29 = vpop.f32.mrb[20].mxu1 }
 0x1d7   : > { %v995_v30 = vpack.c.bf16 %v964_v27, %v963_v25  ;;  %v797_v31 = vadd.f32 %v1538_v29, %v1971_v22  ;;  %v788_v32 = vpop.f32.mrb[21].mxu1 }
 0x1d8   : > { %v789_v33 = vadd.f32 %v1971_v22, %v788_v32  ;;  %v1539_v34 = vpop.f32.mrb[22].mxu1 }
 0x1d9   : > { %v937_v35 = vmul.f32 0.01, %v797_v31  ;;  %v800_v36 = vadd.f32 %v1539_v34, %v1971_v22  ;;  %v791_v37 = vpop.f32.mrb[23].mxu1  ;;  %1572 = vmatprep.mubr.msk.bf16.mxu0 %vm1050_vm7, %v995_v30  ;;  %vm905_vm8 = vcmp.gt.f32.partialorder %v797_v31, 0.0 }
 0x1da   : > { %v935_v38 = vmul.f32 0.01, %v789_v33  ;;  %v792_v40 = vadd.f32 %v1971_v22, %v791_v37  ;;  %1573 = vmatmul.mubr.msk.bf16.vlgmr.msra.gmra.mrb[16].mxu0 %vm1050_vm7, %v996_v26  ;;  %vm903_vm9 = vcmp.gt.f32.partialorder %v789_v33, 0.0 }
 0x1db   : > { %vm906_vm10 = vcmp.gt.f32.partialorder %v800_v36, 0.0  ;;  %v938_v41 = vmul.f32 0.01, %v800_v36  ;;  %v969_v43 = vsel %vm905_vm8, %v797_v31, %v937_v35 }
 0x1dc   : > { %vm904_vm11 = vcmp.gt.f32.partialorder %v792_v40, 0.0  ;;  %v936_v42 = vmul.f32 0.01, %v792_v40  ;;  %v967_v45 = vsel %vm903_vm9, %v789_v33, %v935_v38 }
 0x1dd   : > { %v970_v44 = vsel %vm906_vm10, %v800_v36, %v938_v41 }
 0x1de   : > { %v998_v47 = vpack.c.bf16 %v970_v44, %v969_v43  ;;  %v968_v48 = vsel %vm904_vm11, %v792_v40, %v936_v42  ;;  %v1542_v49 = vpop.f32.mrb[24].mxu1 }
 0x1df   : > { %v997_v50 = vpack.c.bf16 %v968_v48, %v967_v45  ;;  %v813_v51 = vadd.f32 %v1542_v49, %v1971_v22  ;;  %v804_v53 = vpop.f32.mrb[25].mxu1 }
 0x1e0   : > { %v805_v55 = vadd.f32 %v1971_v22, %v804_v53  ;;  %v1543_v57 = vpop.f32.mrb[26].mxu1 }
 0x1e1   : > { %v941_v58 = vmul.f32 0.01, %v813_v51  ;;  %v816_v59 = vadd.f32 %v1543_v57, %v1971_v22  ;;  %v807_v60 = vpop.f32.mrb[27].mxu1  ;;  %1576 = vmatprep.mubr.msk.bf16.mxu0 %vm1050_vm7, %v997_v50  ;;  %vm909_vm12 = vcmp.gt.f32.partialorder %v813_v51, 0.0 }
 0x1e2   : > { %v939_v61 = vmul.f32 0.01, %v805_v55  ;;  %v808_v62 = vadd.f32 %v1971_v22, %v807_v60  ;;  %1577 = vmatmul.mubr.msk.bf16.gmra.mrb[20].mxu0 %vm1050_vm7, %v998_v47  ;;  %vm907_vm13 = vcmp.gt.f32.partialorder %v805_v55, 0.0 }
 0x1e3   : > { %vm910_vm14 = vcmp.gt.f32.partialorder %v816_v59, 0.0  ;;  %v942_v63 = vmul.f32 0.01, %v816_v59  ;;  %v973_v1 = vsel %vm909_vm12, %v813_v51, %v941_v58 }
 0x1e4   : > { %vm908_vm15 = vcmp.gt.f32.partialorder %v808_v62, 0.0  ;;  %v940_v0 = vmul.f32 0.01, %v808_v62  ;;  %v971_v3 = vsel %vm907_vm13, %v805_v55, %v939_v61 }
 0x1e5   : > { %v974_v2 = vsel %vm910_vm14, %v816_v59, %v942_v63 }
 0x1e6   : > { %v1000_v4 = vpack.c.bf16 %v974_v2, %v973_v1  ;;  %v972_v5 = vsel %vm908_vm15, %v808_v62, %v940_v0  ;;  %v1546_v6 = vpop.f32.mrb[28].mxu1 }
 0x1e7   : > { %v999_v7 = vpack.c.bf16 %v972_v5, %v971_v3  ;;  %v829_v8 = vadd.f32 %v1546_v6, %v1971_v22  ;;  %v820_v9 = vpop.f32.mrb[29].mxu1 }
 0x1e8   : > { %v821_v10 = vadd.f32 %v1971_v22, %v820_v9  ;;  %v1547_v11 = vpop.f32.mrb[30].mxu1 }
 0x1e9   : > { %v945_v54 = vmul.f32 0.01, %v829_v8  ;;  %v832_v12 = vadd.f32 %v1547_v11, %v1971_v22  ;;  %v823_v13 = vpop.f32.mrb[31].mxu1  ;;  %1580 = vmatprep.mubr.msk.bf16.mxu0 %vm1050_vm7, %v999_v7  ;;  %vm913_vm0 = vcmp.gt.f32.partialorder %v829_v8, 0.0 }
 0x1ea   : > { %v943_v28 = vmul.f32 0.01, %v821_v10  ;;  %v824_v39 = vadd.f32 %v1971_v22, %v823_v13  ;;  %1581 = vmatmul.mubr.msk.bf16.gmra.mrb[24].mxu0 %vm1050_vm7, %v1000_v4  ;;  %vm911_vm1 = vcmp.gt.f32.partialorder %v821_v10, 0.0 }
 0x1eb   : > { %vm914_vm2 = vcmp.gt.f32.partialorder %v832_v12, 0.0  ;;  %v946_v46 = vmul.f32 0.01, %v832_v12  ;;  %v977_v56 = vsel %vm913_vm0, %v829_v8, %v945_v54 }
 0x1ec   : > { %vm912_vm5 = vcmp.gt.f32.partialorder %v824_v39, 0.0  ;;  %v944_v52 = vmul.f32 0.01, %v824_v39  ;;  %v975_v15 = vsel %vm911_vm1, %v821_v10, %v943_v28 }
 0x1ed   : > { %v978_v14 = vsel %vm914_vm2, %v832_v12, %v946_v46 }
 0x1ee   : > { %v1002_v16 = vpack.c.bf16 %v978_v14, %v977_v56  ;;  %v976_v17 = vsel %vm912_vm5, %v824_v39, %v944_v52  ;;  %v1550_v18 = vpop.f32.mrb[32].mxu1 }
 0x1ef   : > { %v1001_v19 = vpack.c.bf16 %v976_v17, %v975_v15  ;;  %v845_v20 = vadd.f32 %v1550_v18, %v1971_v22  ;;  %v836_v21 = vpop.f32.mrb[33].mxu1 }
 0x1f0   : > { %v837_v23 = vadd.f32 %v1971_v22, %v836_v21  ;;  %v1551_v24 = vpop.f32.mrb[34].mxu1 }
 0x1f1   : > { %v949_v25 = vmul.f32 0.01, %v845_v20  ;;  %v848_v26 = vadd.f32 %v1551_v24, %v1971_v22  ;;  %v839_v27 = vpop.f32.mrb[35].mxu1  ;;  %1584 = vmatprep.mubr.msk.bf16.mxu0 %vm1050_vm7, %v1001_v19  ;;  %vm917_vm3 = vcmp.gt.f32.partialorder %v845_v20, 0.0 }
 0x1f2   : > { %v947_v29 = vmul.f32 0.01, %v837_v23  ;;  %v840_v30 = vadd.f32 %v1971_v22, %v839_v27  ;;  %1585 = vmatmul.mubr.msk.bf16.gmra.mrb[28].mxu0 %vm1050_vm7, %v1002_v16  ;;  %vm915_vm4 = vcmp.gt.f32.partialorder %v837_v23, 0.0 }
 0x1f3   : > { %vm918_vm6 = vcmp.gt.f32.partialorder %v848_v26, 0.0  ;;  %v950_v31 = vmul.f32 0.01, %v848_v26  ;;  %v981_v33 = vsel %vm917_vm3, %v845_v20, %v949_v25 }
 0x1f4   : > { %vm916_vm8 = vcmp.gt.f32.partialorder %v840_v30, 0.0  ;;  %v948_v32 = vmul.f32 0.01, %v840_v30  ;;  %v979_v35 = vsel %vm915_vm4, %v837_v23, %v947_v29 }
 0x1f5   : > { %v982_v34 = vsel %vm918_vm6, %v848_v26, %v950_v31 }
 0x1f6   : > { %v1004_v36 = vpack.c.bf16 %v982_v34, %v981_v33  ;;  %v980_v37 = vsel %vm916_vm8, %v840_v30, %v948_v32  ;;  %v1554_v38 = vpop.f32.mrb[36].mxu1 }
 0x1f7   : > { %v1003_v40 = vpack.c.bf16 %v980_v37, %v979_v35  ;;  %v861_v41 = vadd.f32 %v1554_v38, %v1971_v22  ;;  %v852_v42 = vpop.f32.mrb[37].mxu1 }
 0x1f8   : > { %v853_v43 = vadd.f32 %v1971_v22, %v852_v42  ;;  %v1555_v44 = vpop.f32.mrb[38].mxu1 }
 0x1f9   : > { %v953_v45 = vmul.f32 0.01, %v861_v41  ;;  %v864_v47 = vadd.f32 %v1555_v44, %v1971_v22  ;;  %v855_v48 = vpop.f32.mrb[39].mxu1  ;;  %1588 = vmatprep.mubr.msk.bf16.mxu0 %vm1050_vm7, %v1003_v40  ;;  %vm921_vm9 = vcmp.gt.f32.partialorder %v861_v41, 0.0 }
 0x1fa   : > { %v951_v49 = vmul.f32 0.01, %v853_v43  ;;  %v856_v50 = vadd.f32 %v1971_v22, %v855_v48  ;;  %1589 = vmatmul.mubr.msk.bf16.gmra.mrb[32].mxu0 %vm1050_vm7, %v1004_v36  ;;  %vm919_vm10 = vcmp.gt.f32.partialorder %v853_v43, 0.0 }
 0x1fb   : > { %vm922_vm11 = vcmp.gt.f32.partialorder %v864_v47, 0.0  ;;  %v954_v51 = vmul.f32 0.01, %v864_v47  ;;  %v985_v55 = vsel %vm921_vm9, %v861_v41, %v953_v45 }
 0x1fc   : > { %vm920_vm12 = vcmp.gt.f32.partialorder %v856_v50, 0.0  ;;  %v952_v53 = vmul.f32 0.01, %v856_v50  ;;  %v983_v58 = vsel %vm919_vm10, %v853_v43, %v951_v49 }
 0x1fd   : > { %v986_v57 = vsel %vm922_vm11, %v864_v47, %v954_v51 }
 0x1fe   : > { %v1006_v59 = vpack.c.bf16 %v986_v57, %v985_v55  ;;  %v984_v60 = vsel %vm920_vm12, %v856_v50, %v952_v53  ;;  %v1558_v61 = vpop.f32.mrb[40].mxu1 }
 0x1ff   : > { %v1005_v62 = vpack.c.bf16 %v984_v60, %v983_v58  ;;  %v877_v63 = vadd.f32 %v1558_v61, %v1971_v22  ;;  %v868_v0 = vpop.f32.mrb[41].mxu1 }
 0x200   : > { %v869_v1 = vadd.f32 %v1971_v22, %v868_v0  ;;  %v1559_v2 = vpop.f32.mrb[42].mxu1 }
 0x201   : > { %v957_v3 = vmul.f32 0.01, %v877_v63  ;;  %v880_v4 = vadd.f32 %v1559_v2, %v1971_v22  ;;  %v871_v5 = vpop.f32.mrb[43].mxu1  ;;  %1592 = vmatprep.mubr.msk.bf16.mxu0 %vm1050_vm7, %v1005_v62  ;;  %vm925_vm13 = vcmp.gt.f32.partialorder %v877_v63, 0.0 }
 0x202   : > { %v955_v6 = vmul.f32 0.01, %v869_v1  ;;  %v872_v7 = vadd.f32 %v1971_v22, %v871_v5  ;;  %1593 = vmatmul.mubr.msk.bf16.gmra.mrb[36].mxu0 %vm1050_vm7, %v1006_v59  ;;  %vm923_vm14 = vcmp.gt.f32.partialorder %v869_v1, 0.0 }
 0x203   : > { %vm926_vm15 = vcmp.gt.f32.partialorder %v880_v4, 0.0  ;;  %v958_v8 = vmul.f32 0.01, %v880_v4  ;;  %v989_v10 = vsel %vm925_vm13, %v877_v63, %v957_v3 }
 0x204   : > { %vm924_vm0 = vcmp.gt.f32.partialorder %v872_v7, 0.0  ;;  %v956_v9 = vmul.f32 0.01, %v872_v7  ;;  %v987_v54 = vsel %vm923_vm14, %v869_v1, %v955_v6 }
 0x205   : > { %v990_v11 = vsel %vm926_vm15, %v880_v4, %v958_v8 }
 0x206   : > { %v1008_v12 = vpack.c.bf16 %v990_v11, %v989_v10  ;;  %v988_v13 = vsel %vm924_vm0, %v872_v7, %v956_v9  ;;  %v1562_v28 = vpop.f32.mrb[44].mxu1 }
 0x207   : > { %v1007_v39 = vpack.c.bf16 %v988_v13, %v987_v54  ;;  %v893_v46 = vadd.f32 %v1562_v28, %v1971_v22  ;;  %v884_v52 = vpop.f32.mrb[45].mxu1 }
 0x208   : > { %v885_v56 = vadd.f32 %v1971_v22, %v884_v52  ;;  %v1563_v14 = vpop.f32.mrb[46].mxu1 }
 0x209   : > { %v961_v15 = vmul.f32 0.01, %v893_v46  ;;  %v896_v16 = vadd.f32 %v1563_v14, %v1971_v22  ;;  %v887_v17 = vpop.f32.mrb[47].mxu1  ;;  %1596 = vmatprep.mubr.msk.bf16.mxu0 %vm1050_vm7, %v1007_v39  ;;  %vm929_vm1 = vcmp.gt.f32.partialorder %v893_v46, 0.0 }
 0x20a   : > { %v959_v18 = vmul.f32 0.01, %v885_v56  ;;  %v888_v19 = vadd.f32 %v1971_v22, %v887_v17  ;;  %1597 = vmatmul.mubr.msk.bf16.gmra.mrb[40].mxu0 %vm1050_vm7, %v1008_v12  ;;  %vm927_vm2 = vcmp.gt.f32.partialorder %v885_v56, 0.0  ;;  %v2027_v22 = vld [vmem:[%s2153_s6] ss:$0 sm:$0xff] }
 0x20b   : > { %vm930_vm5 = vcmp.gt.f32.partialorder %v896_v16, 0.0  ;;  %v962_v20 = vmul.f32 0.01, %v896_v16  ;;  %v993_v23 = vsel %vm929_vm1, %v893_v46, %v961_v15 }
 0x20c   : > { %vm928_vm3 = vcmp.gt.f32.partialorder %v888_v19, 0.0  ;;  %v960_v21 = vmul.f32 0.01, %v888_v19  ;;  %v991_v25 = vsel %vm927_vm2, %v885_v56, %v959_v18 }
 0x20d   : > { %v994_v24 = vsel %vm930_vm5, %v896_v16, %v962_v20 }
 0x20e   : > { %v1010_v26 = vpack.c.bf16 %v994_v24, %v993_v23  ;;  %v992_v27 = vsel %vm928_vm3, %v888_v19, %v960_v21 }
 0x20f   : > { %v1009_v29 = vpack.c.bf16 %v992_v27, %v991_v25 }
 0x211   : > { %1600 = vmatprep.mubr.msk.bf16.mxu0 %vm1050_vm7, %v1009_v29 }
 0x212   : > { %1601 = vmatmul.mubr.msk.bf16.gmra.mrb[44].mxu0 %vm1050_vm7, %v1010_v26 }
 0x2ad   : > { %v1574_v30 = vpop.f32.mrb[16].mxu0 }
 0x2ae   : > { %v1142_v31 = vadd.f32 %v1574_v30, %v2027_v22  ;;  %v1133_v32 = vpop.f32.mrb[17].mxu0 }
 0x2af   : > { %v1134_v33 = vadd.f32 %v2027_v22, %v1133_v32  ;;  %v1575_v34 = vpop.f32.mrb[18].mxu0 }
 0x2b0   : > { %1262 = vst [vmem:[%s2031_s9 + $0x10] sm:$0xff] %v1142_v31  ;;  %v1145_v35 = vadd.f32 %v1575_v34, %v2027_v22  ;;  %v1136_v36 = vpop.f32.mrb[19].mxu0 }
 0x2b1   : > { %1260 = vst [vmem:[%s2031_s9] sm:$0xff] %v1134_v33  ;;  %v1137_v37 = vadd.f32 %v2027_v22, %v1136_v36 }
 0x2b2   : > { %1263 = vst [vmem:[%s2031_s9 + $0x18] sm:$0xff] %v1145_v35 }
 0x2b3   : > { %1261 = vst [vmem:[%s2031_s9 + $0x8] sm:$0xff] %v1137_v37 }
 0x2b5   : > { %v1578_v38 = vpop.f32.mrb[20].mxu0 }
 0x2b6   : > { %v1158_v40 = vadd.f32 %v1578_v38, %v2027_v22  ;;  %v1149_v41 = vpop.f32.mrb[21].mxu0 }
 0x2b7   : > { %v1150_v42 = vadd.f32 %v2027_v22, %v1149_v41  ;;  %v1579_v43 = vpop.f32.mrb[22].mxu0 }
 0x2b8   : > { %1266 = vst [vmem:[%s2031_s9 + $0x30] sm:$0xff] %v1158_v40  ;;  %v1161_v44 = vadd.f32 %v1579_v43, %v2027_v22  ;;  %v1152_v45 = vpop.f32.mrb[23].mxu0 }
 0x2b9   : > { %1264 = vst [vmem:[%s2031_s9 + $0x20] sm:$0xff] %v1150_v42  ;;  %v1153_v47 = vadd.f32 %v2027_v22, %v1152_v45 }
 0x2ba   : > { %1267 = vst [vmem:[%s2031_s9 + $0x38] sm:$0xff] %v1161_v44 }
 0x2bb   : > { %1265 = vst [vmem:[%s2031_s9 + $0x28] sm:$0xff] %v1153_v47 }
 0x2bd   : > { %v1582_v48 = vpop.f32.mrb[24].mxu0 }
 0x2be   : > { %v1174_v49 = vadd.f32 %v1582_v48, %v2027_v22  ;;  %v1165_v50 = vpop.f32.mrb[25].mxu0 }
 0x2bf   : > { %v1166_v51 = vadd.f32 %v2027_v22, %v1165_v50  ;;  %v1583_v53 = vpop.f32.mrb[26].mxu0 }
 0x2c0   : > { %1270 = vst [vmem:[%s2031_s9 + $0x50] sm:$0xff] %v1174_v49  ;;  %v1177_v55 = vadd.f32 %v1583_v53, %v2027_v22  ;;  %v1168_v57 = vpop.f32.mrb[27].mxu0 }
 0x2c1   : > { %1268 = vst [vmem:[%s2031_s9 + $0x40] sm:$0xff] %v1166_v51  ;;  %v1169_v58 = vadd.f32 %v2027_v22, %v1168_v57 }
 0x2c2   : > { %1271 = vst [vmem:[%s2031_s9 + $0x58] sm:$0xff] %v1177_v55 }
 0x2c3   : > { %1269 = vst [vmem:[%s2031_s9 + $0x48] sm:$0xff] %v1169_v58 }
 0x2c5   : > { %v1586_v59 = vpop.f32.mrb[28].mxu0 }
 0x2c6   : > { %v1190_v60 = vadd.f32 %v1586_v59, %v2027_v22  ;;  %v1181_v61 = vpop.f32.mrb[29].mxu0 }
 0x2c7   : > { %v1182_v62 = vadd.f32 %v2027_v22, %v1181_v61  ;;  %v1587_v63 = vpop.f32.mrb[30].mxu0 }
 0x2c8   : > { %1274 = vst [vmem:[%s2031_s9 + $0x70] sm:$0xff] %v1190_v60  ;;  %v1193_v0 = vadd.f32 %v1587_v63, %v2027_v22  ;;  %v1184_v1 = vpop.f32.mrb[31].mxu0 }
 0x2c9   : > { %1272 = vst [vmem:[%s2031_s9 + $0x60] sm:$0xff] %v1182_v62  ;;  %v1185_v2 = vadd.f32 %v2027_v22, %v1184_v1 }
 0x2ca   : > { %1275 = vst [vmem:[%s2031_s9 + $0x78] sm:$0xff] %v1193_v0 }
 0x2cb   : > { %1273 = vst [vmem:[%s2031_s9 + $0x68] sm:$0xff] %v1185_v2 }
 0x2cd   : > { %v1590_v3 = vpop.f32.mrb[32].mxu0 }
 0x2ce   : > { %v1206_v4 = vadd.f32 %v1590_v3, %v2027_v22  ;;  %v1197_v5 = vpop.f32.mrb[33].mxu0 }
 0x2cf   : > { %v1198_v6 = vadd.f32 %v2027_v22, %v1197_v5  ;;  %v1591_v7 = vpop.f32.mrb[34].mxu0 }
 0x2d0   : > { %1278 = vst [vmem:[%s2031_s9 + $0x90] sm:$0xff] %v1206_v4  ;;  %v1209_v8 = vadd.f32 %v1591_v7, %v2027_v22  ;;  %v1200_v9 = vpop.f32.mrb[35].mxu0 }
 0x2d1   : > { %1276 = vst [vmem:[%s2031_s9 + $0x80] sm:$0xff] %v1198_v6  ;;  %v1201_v10 = vadd.f32 %v2027_v22, %v1200_v9 }
 0x2d2   : > { %1279 = vst [vmem:[%s2031_s9 + $0x98] sm:$0xff] %v1209_v8 }
 0x2d3   : > { %1277 = vst [vmem:[%s2031_s9 + $0x88] sm:$0xff] %v1201_v10 }
 0x2d5   : > { %v1594_v11 = vpop.f32.mrb[36].mxu0 }
 0x2d6   : > { %v1222_v54 = vadd.f32 %v1594_v11, %v2027_v22  ;;  %v1213_v12 = vpop.f32.mrb[37].mxu0 }
 0x2d7   : > { %v1214_v13 = vadd.f32 %v2027_v22, %v1213_v12  ;;  %v1595_v28 = vpop.f32.mrb[38].mxu0 }
 0x2d8   : > { %1282 = vst [vmem:[%s2031_s9 + $0xb0] sm:$0xff] %v1222_v54  ;;  %v1225_v39 = vadd.f32 %v1595_v28, %v2027_v22  ;;  %v1216_v46 = vpop.f32.mrb[39].mxu0 }
 0x2d9   : > { %1280 = vst [vmem:[%s2031_s9 + $0xa0] sm:$0xff] %v1214_v13  ;;  %v1217_v52 = vadd.f32 %v2027_v22, %v1216_v46 }
 0x2da   : > { %1283 = vst [vmem:[%s2031_s9 + $0xb8] sm:$0xff] %v1225_v39 }
 0x2db   : > { %1281 = vst [vmem:[%s2031_s9 + $0xa8] sm:$0xff] %v1217_v52 }
 0x2dd   : > { %v1598_v56 = vpop.f32.mrb[40].mxu0 }
 0x2de   : > { %v1238_v14 = vadd.f32 %v1598_v56, %v2027_v22  ;;  %v1229_v15 = vpop.f32.mrb[41].mxu0 }
 0x2df   : > { %v1230_v16 = vadd.f32 %v2027_v22, %v1229_v15  ;;  %v1599_v17 = vpop.f32.mrb[42].mxu0 }
 0x2e0   : > { %1286 = vst [vmem:[%s2031_s9 + $0xd0] sm:$0xff] %v1238_v14  ;;  %v1241_v18 = vadd.f32 %v1599_v17, %v2027_v22  ;;  %v1232_v19 = vpop.f32.mrb[43].mxu0 }
 0x2e1   : > { %1284 = vst [vmem:[%s2031_s9 + $0xc0] sm:$0xff] %v1230_v16  ;;  %v1233_v20 = vadd.f32 %v2027_v22, %v1232_v19 }
 0x2e2   : > { %1287 = vst [vmem:[%s2031_s9 + $0xd8] sm:$0xff] %v1241_v18 }
 0x2e3   : > { %1285 = vst [vmem:[%s2031_s9 + $0xc8] sm:$0xff] %v1233_v20 }
 0x2e5   : > { %v1602_v21 = vpop.f32.mrb[44].mxu0 }
 0x2e6   : > { %v1254_v23 = vadd.f32 %v1602_v21, %v2027_v22  ;;  %v1245_v24 = vpop.f32.mrb[45].mxu0 }
 0x2e7   : > { %v1246_v25 = vadd.f32 %v2027_v22, %v1245_v24  ;;  %v1603_v26 = vpop.f32.mrb[46].mxu0 }
 0x2e8   : > { %1290 = vst [vmem:[%s2031_s9 + $0xf0] sm:$0xff] %v1254_v23  ;;  %v1257_v27 = vadd.f32 %v1603_v26, %v2027_v22  ;;  %v1248_v29 = vpop.f32.mrb[47].mxu0 }
 0x2e9   : > { %1288 = vst [vmem:[%s2031_s9 + $0xe0] sm:$0xff] %v1246_v25  ;;  %v1249_v30 = vadd.f32 %v2027_v22, %v1248_v29 }
 0x2ea   : > { %1291 = vst [vmem:[%s2031_s9 + $0xf8] sm:$0xff] %v1257_v27 }
 0x2eb   : > { %1289 = vst [vmem:[%s2031_s9 + $0xe8] sm:$0xff] %v1249_v30 }
 0x2ec   : > { %1667 = shalt.err (!%p1664_p3)
}
 0x2ed   : > { %s1668_s22 = scalar_lea.hbm %s2096_s17, 4096  ;;  %s1672_s8 = scalar_lea.hbm %s2154_s7, 8192 }
 0x2ee   : > { %p1669_p4 = scmp.ne.s32.totalorder %s2096_s17, %s1668_s22  ;;  %p1673_p9 = scmp.lt.u32.totalorder %s2096_s17, %s2154_s7 }
 0x2ef   : > { %p1674_p10 = scmp.lt.u32.totalorder %s1672_s8, %s1668_s22  ;;  %p1676_p12 = scmp.lt.u32.totalorder %s1668_s22, %s2096_s17 }
 0x2f0   : > { %p1670_p7 = pnand %p1669_p4, %p1799_p5 }
 0x2f1   : > { %p1675_p11 = por %p1674_p10, %p1673_p9 }
 0x2f2   : > { %p1671_p8 = pneg %p1670_p7 }
 0x2f3   : > { %p1677_p13 = por %p1676_p12, %p1675_p11 }
 0x2f5   : > { %p1678_p0 = pnand %p1677_p13, %p1671_p8 }
 0x2f7   : > { %1681 = shalt.err (!%p1678_p0)
}
 0x2f8   : > { %s1719_s15 = smov 128   ;;  %s1720_s16 = smov 8  }
 0x2f9   : > { %1606 = dma.vmem_to_hbm [thread:$0]  (%p1799_p5), %s2098_s14, 4096, %s2096_s17, %s2106_s28, %s1719_s15, %s1719_s15, %s1720_s16  }
 0x2fa PF: > { %p1612_p1 = scmp.ge.s32.totalorder %s1716_s27, 2  ;;  %s1321_s18 = sand.u32 1, %s1704_s24  }
 0x2fb   : > { %s1322_s19 = scalar_lea.sflag [#allocation3], %s1321_s18 }
 0x2fc   : > { %p1609_p2 = pnand %p1612_p1, %p1803_p6 }
 0x2fe   : > { %1699 = dma.done.wait (!%p1609_p2), %s1322_s19, 4096  }
 0x2ff   : > { %1701 = vsyncadd (!%p1609_p2), %s1322_s19, 4294963200  ;;  %p17_p3 = scmp.ge.s32.totalorder %s1786_s30, 4   ;;  %s2157_s24 = smov %s1708_s25 }
 0x300   : > { %s2158_s25 = smov %s1712_s26  ;;  %s2159_s26 = smov %s1797_s10 }
 0x301   : > { %s2160_s27 = smov %s1786_s30  ;;  %19 = sbr.rel (!%p17_p3) target bundleno = 3 (0x3), region = 83 }
 0x308   :  { %1327 = vsyncpa [#allocation3], 1 }
 0x309   :  { %1329 = vsyncpa [#allocation3 + $0x1], 1 }

</bundles_post_ra>
